<compile_context>
chip_gen: v5e
topology: v5e:2x2
jax: 0.10.0
libtpu: 0.0.40
codegen_flags: <defaults>
</compile_context>

<pallas_src>
import functools
import math

import jax
import jax.numpy as jnp
from jax import lax
from jax.experimental import pallas as pl
from jax.experimental.pallas import tpu as pltpu


def _pos_enc_kernel(seed_ref, x_ref, pe_ref, o_ref, *, dropout_p, train, block_t):
    """out = dropout(x + pe).  x_ref/o_ref: (B, Tt, D); pe_ref: (Tt, D)."""
    y = x_ref[...] + pe_ref[...][None, :, :]   # pe pre-cast to x.dtype in wrapper

    if train and dropout_p > 0.0:
        # Counter-based hash PRNG (splitmix32-style) over the *global* element
        # coordinates, so the mask is independent of the tiling and the seed is
        # a runtime SMEM scalar (no recompile per training step).
        # TODO(synk): does not reproduce PyTorch's dropout RNG stream (same
        # Bernoulli(p) distribution, different mask).
        shape = y.shape  # (B, block_t, D)
        b_idx = lax.broadcasted_iota(jnp.uint32, shape, 0)
        t_idx = lax.broadcasted_iota(jnp.uint32, shape, 1)
        d_idx = lax.broadcasted_iota(jnp.uint32, shape, 2)
        t_abs = t_idx + jnp.uint32(block_t) * pl.program_id(0).astype(jnp.uint32)
        ctr = (b_idx * jnp.uint32(0x9E3779B9)
               ^ t_abs * jnp.uint32(0x85EBCA6B)
               ^ d_idx * jnp.uint32(0xC2B2AE35))
        h = ctr ^ seed_ref[0].astype(jnp.uint32)
        h = (h ^ (h >> 16)) * jnp.uint32(0x7FEB352D)
        h = (h ^ (h >> 15)) * jnp.uint32(0x846CA68B)
        h = h ^ (h >> 16)
        # Integer-domain keep test on 24 random bits: keep iff bits >= p * 2^24.
        thresh = jnp.uint32(int(round(dropout_p * (1 << 24))))
        keep = (h >> 8) >= thresh
        # TODO(synk): for bit-faithful bf16 vs. PyTorch, do the add/scale in f32
        # and cast once at the store; kept in x.dtype here (memory-bound op).
        scale = jnp.asarray(1.0 / (1.0 - dropout_p), dtype=y.dtype)
        y = jnp.where(keep, y * scale, jnp.zeros_like(y))

    o_ref[...] = y


def make_sinusoidal_table(max_len, d_model, dtype=jnp.float32):
    """Same table as the PyTorch module builds in __init__ (the `pe` buffer)."""
    position = jnp.arange(0.0, max_len, dtype=jnp.float32)[:, None]
    div_term = jnp.exp(
        jnp.arange(0.0, d_model, 2.0, dtype=jnp.float32)
        * -(math.log(10000.0) / d_model)
    )
    pe = jnp.zeros((max_len, d_model), dtype=jnp.float32)
    pe = pe.at[:, 0::2].set(jnp.sin(position * div_term))
    pe = pe.at[:, 1::2].set(jnp.cos(position * div_term))
    return pe.astype(dtype)


def _default_target_bytes():
    """Chip-aware per-block byte target (amortize ~0.35us/grid-step overhead)."""
    try:
        kind = jax.devices()[0].device_kind.lower()
    except Exception:  # pragma: no cover
        return 2 << 20
    if "v7" in kind:
        return 5 << 20   # ~3.2 TB/s per TC; bigger blocks, still << 64 MiB VMEM
    if "v6" in kind:
        return 4 << 20   # fits the 32 MiB default scoped VMEM double-buffered
    return 2 << 20       # v5e (16 MiB default scoped) / unknown / CPU interpret


def positional_encoding_forward(x, pe, *, dropout_p=0.0, train=False, seed=0,
                                block_t=None):
    """dropout(x + pe[:T]) — x: (B, T, D), pe: (max_len, D)."""
    b, t, d = x.shape
    assert pe.shape[-1] == d and pe.shape[-2] >= t
    if pe.dtype != x.dtype:
        pe = pe.astype(x.dtype)  # lane-dense, half the PE DMA bytes for bf16 x

    itemsize = jnp.dtype(x.dtype).itemsize
    pack = max(8, 32 // itemsize)            # packed sublane multiple: 8/16/32

    if block_t is None:
        bytes_per_row = b * d * itemsize
        target_bytes = _default_target_bytes()
        block_t = max(pack, (max(1, target_bytes // bytes_per_row) // pack) * pack)
    block_t = max(pack, (int(block_t) // pack) * pack)
    t_ceil = ((t + pack - 1) // pack) * pack
    block_t = min(block_t, t_ceil)

    grid = (pl.cdiv(t, block_t),)            # ragged last block is masked by Pallas

    seed_arr = jnp.asarray([seed], dtype=jnp.int32)

    kernel = functools.partial(
        _pos_enc_kernel,
        dropout_p=float(dropout_p),
        train=bool(train),
        block_t=int(block_t),
    )

    return pl.pallas_call(
        kernel,
        out_shape=jax.ShapeDtypeStruct((b, t, d), x.dtype),
        grid_spec=pltpu.PrefetchScalarGridSpec(
            num_scalar_prefetch=1,           # seed lives in SMEM at runtime
            grid=grid,
            in_specs=[
                pl.BlockSpec((b, block_t, d), lambda j, seed: (0, j, 0)),  # x
                pl.BlockSpec((block_t, d), lambda j, seed: (j, 0)),        # pe
            ],
            out_specs=pl.BlockSpec((b, block_t, d), lambda j, seed: (0, j, 0)),
        ),
        compiler_params=pltpu.CompilerParams(
            dimension_semantics=("parallel",),
        ),
    )(seed_arr, x, pe)


if __name__ == "__main__":
    key = jax.random.PRNGKey(0)
    batch, seq, d_model = 2, 64, 128
    max_len = 256
    dropout_p = 0.1

    x = jax.random.normal(key, (batch, seq, d_model), dtype=jnp.float32)
    pe = make_sinusoidal_table(max_len, d_model)
    ref = x + pe[None, :seq, :]

    # Eval / inference mode: dropout is identity; verify against the reference.
    out = positional_encoding_forward(x, pe, dropout_p=dropout_p, train=False)
    out = jax.block_until_ready(out)
    assert out.shape == (batch, seq, d_model), out.shape
    assert jnp.allclose(out, ref, atol=1e-6), "mismatch vs reference (eval mode)"

    # Ragged sequence length (T not a multiple of block_t): exercises the
    # cdiv grid + masked last block instead of the old block_t=T fallback.
    seq_r = 40
    x_r = jax.random.normal(jax.random.PRNGKey(1), (batch, seq_r, d_model),
                            dtype=jnp.float32)
    out_r = positional_encoding_forward(x_r, pe, dropout_p=dropout_p,
                                        train=False, block_t=16)
    out_r = jax.block_until_ready(out_r)
    ref_r = x_r + pe[None, :seq_r, :]
    assert jnp.allclose(out_r, ref_r, atol=1e-6), "mismatch vs reference (ragged T)"

    # Training mode: kept elements are scaled by 1/(1-p); dropped are exactly 0.
    out_tr = positional_encoding_forward(
        x, pe, dropout_p=dropout_p, train=True, seed=1234
    )
    out_tr = jax.block_until_ready(out_tr)
    kept = out_tr != 0.0
    scaled_ref = ref / (1.0 - dropout_p)
    assert jnp.allclose(
        jnp.where(kept, scaled_ref, 0.0), out_tr, atol=1e-5, rtol=1e-5
    ), "training-mode values mismatch"
    drop_frac = float(1.0 - jnp.mean(kept.astype(jnp.float32)))
    assert 0.02 < drop_frac < 0.30, f"implausible dropout fraction {drop_frac}"

    # Different seed -> different mask, without recompiling (seed is runtime data).
    out_tr2 = jax.block_until_ready(positional_encoding_forward(
        x, pe, dropout_p=dropout_p, train=True, seed=4321))
    assert not jnp.array_equal(out_tr, out_tr2), "seed change did not change mask"

    print("KERNEL_OK")
</pallas_src>

<mosaic_0001>
module attributes {stable_mosaic.version = 11 : i64} {
  func.func @_pos_enc_kernel(%arg0: i32, %arg1: memref<1xi32, #tpu.memory_space<smem>>, %arg2: memref<2x64x128xf32, #tpu.memory_space<vmem>>, %arg3: memref<64x128xf32, #tpu.memory_space<vmem>>, %arg4: memref<2x64x128xf32, #tpu.memory_space<vmem>>) attributes {dimension_semantics = [#tpu.dimension_semantics<parallel>], iteration_bounds = array<i64: 1>, scalar_prefetch = 1 : i64, scratch_operands = 0 : i64, tpu.core_type = #tpu.core_type<tc>, window_params = [{transform_indices = @transform_0, window_bounds = array<i64: 2, 64, 128>}, {transform_indices = @transform_1, window_bounds = array<i64: 64, 128>}, {transform_indices = @transform_2, window_bounds = array<i64: 2, 64, 128>}]} {
    %c0 = arith.constant 0 : index
    %c0_0 = arith.constant 0 : index
    %c0_1 = arith.constant 0 : index
    %0 = vector.load %arg2[%c0, %c0_0, %c0_1] : memref<2x64x128xf32, #tpu.memory_space<vmem>>, vector<2x64x128xf32>
    %c0_2 = arith.constant 0 : index
    %c0_3 = arith.constant 0 : index
    %1 = vector.load %arg3[%c0_2, %c0_3] : memref<64x128xf32, #tpu.memory_space<vmem>>, vector<64x128xf32>
    %2 = vector.shape_cast %1 : vector<64x128xf32> to vector<1x64x128xf32>
    %3 = vector.broadcast %2 : vector<1x64x128xf32> to vector<2x64x128xf32>
    %4 = arith.addf %0, %3 : vector<2x64x128xf32>
    %c0_4 = arith.constant 0 : index
    %c0_5 = arith.constant 0 : index
    %c0_6 = arith.constant 0 : index
    %5 = vector.load %arg4[%c0_4, %c0_5, %c0_6] : memref<2x64x128xf32, #tpu.memory_space<vmem>>, vector<2x64x128xf32>
    tpu.vector_store %arg4[%c0_4, %c0_5, %c0_6], %4 {strides = array<i32>} : memref<2x64x128xf32, #tpu.memory_space<vmem>>, vector<2x64x128xf32>,
    return
  }
  func.func @transform_0(%arg0: i32, %arg1: memref<1xi32, #tpu.memory_space<smem>>) -> (i32, i32, i32) {
    %c0_i32 = arith.constant 0 : i32
    %c0_i32_0 = arith.constant 0 : i32
    %c0_i32_1 = arith.constant 0 : i32
    return %c0_i32, %arg0, %c0_i32_0 : i32, i32, i32
  }
  func.func @transform_1(%arg0: i32, %arg1: memref<1xi32, #tpu.memory_space<smem>>) -> (i32, i32) {
    %c0_i32 = arith.constant 0 : i32
    %c0_i32_0 = arith.constant 0 : i32
    return %arg0, %c0_i32 : i32, i32
  }
  func.func @transform_2(%arg0: i32, %arg1: memref<1xi32, #tpu.memory_space<smem>>) -> (i32, i32, i32) {
    %c0_i32 = arith.constant 0 : i32
    %c0_i32_0 = arith.constant 0 : i32
    %c0_i32_1 = arith.constant 0 : i32
    return %c0_i32, %arg0, %c0_i32_0 : i32, i32, i32
  }
}

</mosaic_0001>

<bundles_post_ra>
// kernel: tpu_custom_call.1
= control target key start
LH: loop header
LB: loop body
LE: loop exit
PB: predicated region body
PF: predicated region fallthrough
CT: control target
= control target key end

     0   :  { %9 = vsyncpa [#allocation5], 0  ;;  %s248_s0 = inlined_call_operand.<no memory space> [shape: s32[1], index: 0, kind: input, shape index: {}]   ;;  %s249_s1 = inlined_call_operand.hbm [shape: f32[2,64,128], index: 1, kind: input, shape index: {}]   ;;  %s250_s2 = inlined_call_operand.hbm [shape: f32[256,128], index: 2, kind: input, shape index: {}]   ;;  %s251_s3 = inlined_call_operand.hbm [shape: f32[2,64,128], index: 3, kind: output, shape index: {}]  }
   0x1   :  { %10 = vsyncpa [#allocation8], 0 }
   0x2   :  { %11 = vsyncpa [#allocation6], 0  ;;  %s16_s14 = sshll.u32 %s249_s1, 4  ;;  %s205_s15 = smov [#allocation4]   ;;  %s17_s14 = int_to_ptr.hbm [resolvable:$true] %s16_s14 }
   0x3   :  { %s18_s16 = sshll.u32 %s205_s15, 4  ;;  %s29_s18 = sshll.u32 %s250_s2, 4  ;;  %s19_s16 = int_to_ptr.vmem [resolvable:$true] %s18_s16  ;;  %s30_s18 = int_to_ptr.hbm [resolvable:$true] %s29_s18 }
   0x4   :  { %s206_s19 = smov 128   ;;  %s207_s20 = smov 8  }
   0x5   :  { %24 = dma.hbm_to_vmem [thread:$0]  %s17_s14, 2048, %s19_s16, [#allocation5], %s206_s19, %s206_s19, %s207_s20  }
   0x6   :  { %s208_s21 = smov [#allocation7]  }
   0x7   :  { %s31_s22 = sshll.u32 %s208_s21, 4  ;;  %s32_s22 = int_to_ptr.vmem [resolvable:$true] %s31_s22 }
   0x8   :  { %37 = dma.hbm_to_vmem [thread:$0]  %s30_s18, 1024, %s32_s22, [#allocation8], %s206_s19, %s206_s19, %s207_s20  }
   0x9   :  { %199 = dma.done.wait [#allocation5], 2048  }
   0xa   :  { %200 = vsyncadd [#allocation5], 4294965248 }
   0xb   :  { %201 = dma.done.wait [#allocation8], 1024  }
   0xc   :  { %202 = vsyncadd [#allocation8], 4294966272  ;;  %v46_v0 = vld [vmem:[#allocation4] sm:$0xff]  ;;  %v47_v2 = vld [vmem:[#allocation4 + $0x8] sm:$0xff]  ;;  %s209_s1 = smov [#allocation9]   ;;  %s108_s25 = sshll.u32 %s251_s3, 4  ;;  %s109_s25 = int_to_ptr.hbm [resolvable:$true] %s108_s25 }
   0xd   :  { %v62_v1 = vld [vmem:[#allocation7] sm:$0xff]  ;;  %v63_v4 = vld [vmem:[#allocation7 + $0x8] sm:$0xff]  ;;  %v48_v5 = vld [vmem:[#allocation4 + $0x10] sm:$0xff]  ;;  %s106_s2 = sshll.u32 %s209_s1, 4  ;;  %s107_s2 = int_to_ptr.vmem [resolvable:$true] %s106_s2 }
   0xe   :  { %v70_v3 = vadd.f32 %v62_v1, %v46_v0  ;;  %v64_v6 = vld [vmem:[#allocation7 + $0x10] sm:$0xff]  ;;  %v71_v7 = vadd.f32 %v63_v4, %v47_v2  ;;  %v49_v9 = vld [vmem:[#allocation4 + $0x18] sm:$0xff]  ;;  %v50_v11 = vld [vmem:[#allocation4 + $0x20] sm:$0xff] }
   0xf   :  { %v72_v8 = vadd.f32 %v64_v6, %v48_v5  ;;  %v65_v10 = vld [vmem:[#allocation7 + $0x18] sm:$0xff]  ;;  %v66_v13 = vld [vmem:[#allocation7 + $0x20] sm:$0xff]  ;;  %v51_v14 = vld [vmem:[#allocation4 + $0x28] sm:$0xff] }
  0x10   :  { %86 = vst [vmem:[#allocation9] sm:$0xff] %v70_v3  ;;  %v73_v12 = vadd.f32 %v65_v10, %v49_v9  ;;  %v67_v15 = vld [vmem:[#allocation7 + $0x28] sm:$0xff]  ;;  %v74_v16 = vadd.f32 %v66_v13, %v50_v11  ;;  %v52_v18 = vld [vmem:[#allocation4 + $0x30] sm:$0xff]  ;;  %v53_v20 = vld [vmem:[#allocation4 + $0x38] sm:$0xff] }
  0x11   :  { %87 = vst [vmem:[#allocation9 + $0x8] sm:$0xff] %v71_v7  ;;  %v75_v17 = vadd.f32 %v67_v15, %v51_v14  ;;  %v68_v19 = vld [vmem:[#allocation7 + $0x30] sm:$0xff]  ;;  %v69_v22 = vld [vmem:[#allocation7 + $0x38] sm:$0xff]  ;;  %v54_v23 = vld [vmem:[#allocation4 + $0x40] sm:$0xff] }
  0x12   :  { %88 = vst [vmem:[#allocation9 + $0x10] sm:$0xff] %v72_v8  ;;  %v76_v21 = vadd.f32 %v68_v19, %v52_v18  ;;  %v55_v24 = vld [vmem:[#allocation4 + $0x48] sm:$0xff]  ;;  %v77_v25 = vadd.f32 %v69_v22, %v53_v20  ;;  %v56_v26 = vld [vmem:[#allocation4 + $0x50] sm:$0xff]  ;;  %v78_v27 = vadd.f32 %v62_v1, %v54_v23  ;;  %v57_v28 = vld [vmem:[#allocation4 + $0x58] sm:$0xff] }
  0x13   :  { %89 = vst [vmem:[#allocation9 + $0x18] sm:$0xff] %v73_v12  ;;  %v79_v29 = vadd.f32 %v63_v4, %v55_v24  ;;  %v58_v30 = vld [vmem:[#allocation4 + $0x60] sm:$0xff]  ;;  %v80_v31 = vadd.f32 %v64_v6, %v56_v26  ;;  %v59_v32 = vld [vmem:[#allocation4 + $0x68] sm:$0xff]  ;;  %v81_v33 = vadd.f32 %v65_v10, %v57_v28  ;;  %v60_v34 = vld [vmem:[#allocation4 + $0x70] sm:$0xff] }
  0x14   :  { %90 = vst [vmem:[#allocation9 + $0x20] sm:$0xff] %v74_v16  ;;  %v82_v35 = vadd.f32 %v66_v13, %v58_v30  ;;  %v61_v36 = vld [vmem:[#allocation4 + $0x78] sm:$0xff]  ;;  %v83_v37 = vadd.f32 %v67_v15, %v59_v32  ;;  %v84_v38 = vadd.f32 %v68_v19, %v60_v34 }
  0x15   :  { %91 = vst [vmem:[#allocation9 + $0x28] sm:$0xff] %v75_v17  ;;  %v85_v39 = vadd.f32 %v69_v22, %v61_v36 }
  0x16   :  { %92 = vst [vmem:[#allocation9 + $0x30] sm:$0xff] %v76_v21 }
  0x17   :  { %93 = vst [vmem:[#allocation9 + $0x38] sm:$0xff] %v77_v25 }
  0x18   :  { %94 = vst [vmem:[#allocation9 + $0x40] sm:$0xff] %v78_v27 }
  0x19   :  { %95 = vst [vmem:[#allocation9 + $0x48] sm:$0xff] %v79_v29 }
  0x1a   :  { %96 = vst [vmem:[#allocation9 + $0x50] sm:$0xff] %v80_v31 }
  0x1b   :  { %97 = vst [vmem:[#allocation9 + $0x58] sm:$0xff] %v81_v33 }
  0x1c   :  { %98 = vst [vmem:[#allocation9 + $0x60] sm:$0xff] %v82_v35 }
  0x1d   :  { %99 = vst [vmem:[#allocation9 + $0x68] sm:$0xff] %v83_v37 }
  0x1e   :  { %100 = vst [vmem:[#allocation9 + $0x70] sm:$0xff] %v84_v38 }
  0x1f   :  { %101 = vst [vmem:[#allocation9 + $0x78] sm:$0xff] %v85_v39 }
  0x20   :  { %114 = dma.vmem_to_hbm [thread:$0]  %s107_s2, 2048, %s109_s25, [#allocation6], %s206_s19, %s206_s19, %s207_s20  }
  0x21   :  { %203 = dma.done.wait [#allocation6], 2048  }
  0x22   :  { %204 = vsyncadd [#allocation6], 4294965248 }
  0x23   :  { %119 = vsyncpa [#allocation5], 1 }
  0x24   :  { %120 = vsyncpa [#allocation8], 1 }
  0x25   :  { %121 = vsyncpa [#allocation6], 1 }

</bundles_post_ra>
